<compile_context>
chip_gen: v7x
topology: tpu7x:2x2x1
jax: 0.10.0
libtpu: 0.0.40
codegen_flags: <defaults>
</compile_context>

<pallas_src>
import functools

import jax
import jax.numpy as jnp
from jax import lax
from jax.experimental import pallas as pl
from jax.experimental.pallas import tpu as pltpu

_F32 = jnp.float32


def _loss_kernel(pred_ref, targ_ref, prob_ref, mask_ref, volt_ref, thick_ref,
                 out_ref, num_acc, den_acc, *,
                 batch, seq, threshold, w_pred, w_bd, w_mono, w_smooth,
                 w_phys, has_physics):
    step = pl.program_id(0)
    nsteps = pl.num_programs(0)

    @pl.when(step == 0)
    def _init():
        num_acc[...] = jnp.zeros_like(num_acc)
        den_acc[...] = jnp.zeros_like(den_acc)

    pred = pred_ref[...]            # (TR, C) f32 ; row/lane padding is zeros
    targ = targ_ref[...]
    prob = prob_ref[...]
    mask = mask_ref[...]            # 0/1 float, 0 in all padding

    _, cols = pred.shape

    # lane helpers built once at (1, C) and broadcast
    lane = lax.broadcasted_iota(jnp.int32, (1, cols), 1)
    m1 = (lane < (seq - 1)).astype(_F32)     # lanes with a valid +1 neighbour
    m2 = (lane < (seq - 2)).astype(_F32)     # lanes with valid +1 and +2

    def roll_left(x, k):
        # lane j picks up x[:, j + k]; wrapped lanes are killed by m1/m2/mask
        return pltpu.roll(x, shift=(cols - k) % cols, axis=1)

    pred_s1 = roll_left(pred, 1)
    pred_s2 = roll_left(pred, 2)
    mask_s1 = roll_left(mask, 1)
    mask_s2 = roll_left(mask, 2)

    # ---------------- prediction: masked MSE pieces ----------------
    err = (pred - targ) * mask
    err_sq = jnp.sum(err * err)
    mask_s = jnp.sum(mask)

    # ---------------- breakdown target + weighted BCE ----------------
    masked_idx = jnp.where(mask > 0.0, lane, -1)               # (TR, C) int32
    last_valid = jnp.max(masked_idx, axis=1, keepdims=True)    # (TR, 1)
    is_last = lane == last_valid            # padded rows: last_valid=-1 -> never
    bt_cond = jnp.logical_or(last_valid < (seq - 1), targ >= 0.95 * threshold)
    bt = jnp.logical_and(is_last, bt_cond).astype(_F32)        # exactly 0/1

    eps = 1e-7
    pc = jnp.clip(prob, eps, 1.0 - eps)
    bce = -jnp.log(jnp.where(bt > 0.5, pc, 1.0 - pc))          # single-log BCE
    weight = jnp.where(bt > 0.5, 5.0, mask)
    bce_w = jnp.sum(bce * weight)
    w_s = jnp.sum(weight)

    # ---------------- monotonicity ----------------
    diff1 = pred_s1 - pred                      # pred[:, j+1] - pred[:, j]
    pairs = mask_s1 * mask * m1
    pair_s = jnp.sum(pairs)
    mono_n = jnp.sum(jnp.maximum(-diff1, 0.0) * pairs)

    # ---------------- smoothness ----------------
    sdiff = pred_s2 - 2.0 * pred_s1 + pred
    trips = mask_s2 * mask_s1 * mask * m2
    trip_s = jnp.sum(trips)
    smooth_n = jnp.sum(jnp.abs(sdiff) * trips)

    # ---------------- boundary ----------------
    bound_n = jnp.sum(jnp.maximum(pred - threshold, 0.0))

    # ---------------- physics (field-driven degradation rate) ----------------
    if has_physics:
        volt = volt_ref[...]                    # (TR, 1)
        thick = thick_ref[...]                  # (TR, 1); padded rows = 1.0
        # log(max(exp(0.1*E), 1e-8)) == 0.1*E exactly for E >= 0
        log_ff = 0.1 * (jnp.abs(volt) / thick * 1e-7)
        vmask = mask * m1                       # valid_mask[:, :-1]
        counts = jnp.maximum(jnp.sum(vmask, axis=1, keepdims=True), 1.0)
        rate_sum = jnp.sum(diff1 * vmask, axis=1, keepdims=True)
        avg_rate = rate_sum / counts            # (TR, 1)
        sel = (avg_rate > 0.0).astype(_F32)
        log_ar = jnp.log(jnp.maximum(avg_rate, 1e-8))
        phys_n = jnp.sum((log_ar - log_ff) ** 2 * sel)
        sel_s = jnp.sum(sel)
        # valid_mask[:, 1:].sum() reuses mask_s (no extra full-plane pass)
        mask1_s = mask_s - jnp.sum(mask[:, 0:1])
    else:
        phys_n = 0.0
        sel_s = 0.0
        mask1_s = 0.0

    # ---------------- accumulate per-tile scalars (one vreg each) ----------------
    lane_o = lax.broadcasted_iota(jnp.int32, (1, 128), 1)

    def pack(vals):
        out = jnp.zeros((1, 128), _F32)
        for c, v in vals:
            out = jnp.where(lane_o == c, v, out)
        return out

    num_acc[...] += pack([(0, err_sq), (1, bce_w), (2, mono_n),
                          (3, smooth_n), (4, phys_n), (5, bound_n)])
    den_acc[...] += pack([(0, mask_s), (1, w_s), (2, pair_s),
                          (3, trip_s), (4, sel_s), (6, mask1_s)])

    # ---------------- epilogue: gates + divisions, vectorized ----------------
    @pl.when(step == nsteps - 1)
    def _finish():
        num = num_acc[...]
        den = den_acc[...]
        # lane 5 denominator is the (static) B*S*10 (folds the 0.1 boundary scale)
        den_c = jnp.where(lane_o == 5, float(batch * seq) * 10.0, den)
        if has_physics:
            mask1_sum = jnp.sum(den * (lane_o == 6).astype(_F32))
            phys_ok = mask1_sum > 0.0
        else:
            phys_ok = False
        gate = jnp.logical_and(den_c > 0.0,
                               jnp.logical_or(lane_o != 4, phys_ok)).astype(_F32)
        loss_vec = gate * num / jnp.maximum(den_c, 1.0)
        wv = pack([(0, w_pred), (1, w_bd), (2, w_mono),
                   (3, w_smooth), (4, w_phys), (5, 1.0)])
        total = jnp.sum(loss_vec * wv)
        out = loss_vec + jnp.where(lane_o == 6, total, 0.0)
        out_ref[...] = jnp.broadcast_to(out, out_ref.shape)


def physics_informed_loss(predictions, targets, breakdown_prob, valid_mask,
                          voltage=None, thickness=None, *,
                          prediction_weight=1.0, breakdown_weight=0.5,
                          monotonic_weight=0.2, smoothness_weight=0.1,
                          physics_weight=0.3, breakdown_threshold=200.0,
                          row_tile=None):
    B, S = predictions.shape
    has_physics = (voltage is not None) and (thickness is not None) and (S > 1)

    # Lane padding only when S is not already a multiple of 128 (zero cost for
    # aligned S); keeps the verified pltpu.roll lowering for the shifted diffs.
    C = ((S + 127) // 128) * 128

    # Row tile: multiple of 8, sized so the 4 f32 planes per block stay <= ~8 MiB
    # (<= ~16 MiB double-buffered -> fits every generation's VMEM comfortably).
    rows8 = max(8, ((B + 7) // 8) * 8)
    bytes_per_row = 4 * C * 4
    cap_rows = max(8, ((8 * 1024 * 1024) // bytes_per_row) // 8 * 8)
    tr = row_tile if row_tile is not None else min(rows8, cap_rows, 1024)
    tr = max(8, (tr // 8) * 8)
    rows = ((rows8 + tr - 1) // tr) * tr
    grid = (rows // tr,)

    pad_r, pad_c = rows - B, C - S

    def prep(x):
        x = x.astype(_F32)
        if pad_r or pad_c:
            x = jnp.pad(x, ((0, pad_r), (0, pad_c)))
        return x

    pred = prep(predictions)
    targ = prep(targets)
    prob = prep(breakdown_prob)
    mask = prep(valid_mask)

    v = (jnp.zeros((B,), _F32) if voltage is None else voltage.astype(_F32)).reshape(B, 1)
    t = (jnp.ones((B,), _F32) if thickness is None else thickness.astype(_F32)).reshape(B, 1)
    if pad_r:
        v = jnp.pad(v, ((0, pad_r), (0, 0)))
        t = jnp.pad(t, ((0, pad_r), (0, 0)), constant_values=1.0)  # avoid /0

    kernel = functools.partial(
        _loss_kernel, batch=B, seq=S, threshold=float(breakdown_threshold),
        w_pred=float(prediction_weight), w_bd=float(breakdown_weight),
        w_mono=float(monotonic_weight), w_smooth=float(smoothness_weight),
        w_phys=float(physics_weight), has_physics=has_physics)

    block2d = (tr, C)
    vmem_bytes = 2 * (4 * tr * C * 4 + 2 * tr * 4) + 4 * 8 * 128 * 4 + (1 << 20)
    vmem_limit = int(min(128 * 1024 * 1024, max(32 * 1024 * 1024, vmem_bytes)))

    out = pl.pallas_call(
        kernel,
        out_shape=jax.ShapeDtypeStruct((8, 128), _F32),
        grid_spec=pltpu.PrefetchScalarGridSpec(
            num_scalar_prefetch=0,
            grid=grid,
            in_specs=[pl.BlockSpec(block2d, lambda i: (i, 0)),
                      pl.BlockSpec(block2d, lambda i: (i, 0)),
                      pl.BlockSpec(block2d, lambda i: (i, 0)),
                      pl.BlockSpec(block2d, lambda i: (i, 0)),
                      pl.BlockSpec((tr, 1), lambda i: (i, 0)),
                      pl.BlockSpec((tr, 1), lambda i: (i, 0))],
            out_specs=pl.BlockSpec((8, 128), lambda i: (0, 0)),
            scratch_shapes=[pltpu.VMEM((1, 128), _F32),
                            pltpu.VMEM((1, 128), _F32)]),
        compiler_params=pltpu.CompilerParams(
            dimension_semantics=("arbitrary",),
            vmem_limit_bytes=vmem_limit),
    )(pred, targ, prob, mask, v, t)

    vals = out[0]   # loss k lives at lane k of row 0
    names = ('prediction', 'breakdown', 'monotonic', 'smoothness',
             'physics', 'boundary', 'total')
    return {n: vals[i] for i, n in enumerate(names)}


def reference_loss(pred, targ, prob, mask_bool, volt, thick, *,
                   thr=200.0, w_pred=1.0, w_bd=0.5, w_mono=0.2,
                   w_smooth=0.1, w_phys=0.3):
    """Pure-JAX mirror of the PyTorch forward (same gating via where)."""
    f32 = jnp.float32
    mask = mask_bool.astype(f32)
    B, S = pred.shape
    msum = mask.sum()
    pred_loss = jnp.where(msum > 0,
                          (((pred - targ) * mask) ** 2).sum() / jnp.maximum(msum, 1.0),
                          0.0)

    idx = jnp.arange(S)[None, :]
    last_valid = jnp.max(jnp.where(mask > 0, idx, -1), axis=1, keepdims=True)
    has_valid = last_valid >= 0
    is_last = (idx == last_valid) & has_valid
    bt = jnp.where(is_last & ((last_valid < S - 1) | (targ >= 0.95 * thr)), 1.0, 0.0)
    eps = 1e-7
    pc = jnp.clip(prob, eps, 1 - eps)
    bce = -(bt * jnp.log(pc) + (1 - bt) * jnp.log(1 - pc))
    w = jnp.where(bt > 0.5, 5.0, mask)
    bd_loss = jnp.where(msum > 0, (bce * w).sum() / jnp.maximum(w.sum(), 1.0), 0.0)

    diff = pred[:, 1:] - pred[:, :-1]
    pairs = mask[:, 1:] * mask[:, :-1]
    mono = jnp.where(pairs.sum() > 0,
                     (jnp.maximum(-diff, 0.0) * pairs).sum() / jnp.maximum(pairs.sum(), 1.0),
                     0.0)

    sdiff = pred[:, 2:] - 2 * pred[:, 1:-1] + pred[:, :-2]
    trips = mask[:, 2:] * mask[:, 1:-1] * mask[:, :-2]
    smooth = jnp.where(trips.sum() > 0,
                       (jnp.abs(sdiff) * trips).sum() / jnp.maximum(trips.sum(), 1.0),
                       0.0)

    ef = jnp.abs(volt) / thick * 1e-7
    ff = jnp.exp(0.1 * ef)
    vdiff = diff * mask[:, :-1]
    counts = jnp.maximum(mask[:, :-1].sum(axis=1), 1.0)
    avg_rate = vdiff.sum(axis=1) / counts
    sel = (avg_rate > 0).astype(f32)
    sq = (jnp.log(jnp.maximum(avg_rate, 1e-8)) - jnp.log(jnp.maximum(ff, 1e-8))) ** 2 * sel
    gate = (sel.sum() > 0) & (mask[:, 1:].sum() > 0)
    phys = jnp.where(gate, sq.sum() / jnp.maximum(sel.sum(), 1.0), 0.0)

    boundary = jnp.maximum(pred - thr, 0.0).mean() * 0.1
    total = (w_pred * pred_loss + w_bd * bd_loss + w_mono * mono
             + w_smooth * smooth + w_phys * phys + boundary)
    return {'prediction': pred_loss, 'breakdown': bd_loss, 'monotonic': mono,
            'smoothness': smooth, 'physics': phys, 'boundary': boundary,
            'total': total}


if __name__ == "__main__":
    key = jax.random.PRNGKey(0)
    k1, k2, k3 = jax.random.split(key, 3)
    B, S = 2, 8
    steps = jax.random.uniform(k1, (B, S), minval=0.5, maxval=5.0)
    predictions = jnp.cumsum(steps, axis=1).astype(jnp.float32)
    targets = (predictions + 0.5 * jax.random.normal(k2, (B, S))).astype(jnp.float32)
    breakdown_prob = jax.random.uniform(k3, (B, S), minval=0.05, maxval=0.95)
    lengths = jnp.array([S, 5])                       # second sample breaks down early
    valid_mask = jnp.arange(S)[None, :] < lengths[:, None]
    voltage = jnp.array([3.0, 5.0], jnp.float32)
    thickness = jnp.array([1e-7, 2e-7], jnp.float32)

    losses = physics_informed_loss(predictions, targets, breakdown_prob,
                                   valid_mask, voltage, thickness)
    losses = jax.block_until_ready(losses)

    ref = reference_loss(predictions, targets, breakdown_prob, valid_mask,
                         voltage, thickness)
    for name in ref:
        got, want = float(losses[name]), float(ref[name])
        assert abs(got - want) <= 1e-3 * max(1.0, abs(want)), (name, got, want)

    # exercise the no-physics static branch (voltage/thickness omitted)
    losses_np = jax.block_until_ready(
        physics_informed_loss(predictions, targets, breakdown_prob, valid_mask))
    assert float(losses_np['physics']) == 0.0
    want_total = float(ref['total']) - 0.3 * float(ref['physics'])
    got_total = float(losses_np['total'])
    assert abs(got_total - want_total) <= 1e-3 * max(1.0, abs(want_total))

    print("KERNEL_OK")
</pallas_src>

<mosaic_0001>
module attributes {stable_mosaic.version = 11 : i64} {
  func.func @_loss_kernel(%arg0: i32, %arg1: memref<8x128xf32, #tpu.memory_space<vmem>>, %arg2: memref<8x128xf32, #tpu.memory_space<vmem>>, %arg3: memref<8x128xf32, #tpu.memory_space<vmem>>, %arg4: memref<8x128xf32, #tpu.memory_space<vmem>>, %arg5: memref<8x1xf32, #tpu.memory_space<vmem>>, %arg6: memref<8x1xf32, #tpu.memory_space<vmem>>, %arg7: memref<8x128xf32, #tpu.memory_space<vmem>>, %arg8: memref<1x128xf32, #tpu.memory_space<vmem>>, %arg9: memref<1x128xf32, #tpu.memory_space<vmem>>) attributes {dimension_semantics = [#tpu.dimension_semantics<arbitrary>], iteration_bounds = array<i64: 1>, scalar_prefetch = 0 : i64, scratch_operands = 2 : i64, tpu.core_type = #tpu.core_type<tc>, window_params = [{transform_indices = @transform_0, window_bounds = array<i64: 8, 128>}, {transform_indices = @transform_1, window_bounds = array<i64: 8, 128>}, {transform_indices = @transform_2, window_bounds = array<i64: 8, 128>}, {transform_indices = @transform_3, window_bounds = array<i64: 8, 128>}, {transform_indices = @transform_4, window_bounds = array<i64: 8, 1>}, {transform_indices = @transform_5, window_bounds = array<i64: 8, 1>}, {pipeline_mode = #tpu.pipeline_mode<synchronous>, transform_indices = @transform_6, window_bounds = array<i64: 8, 128>}]} {
    %c0_i32 = arith.constant 0 : i32
    %0 = arith.cmpi eq, %arg0, %c0_i32 : i32
    %1 = arith.extui %0 : i1 to i32
    %c0_i32_0 = arith.constant 0 : i32
    %2 = arith.cmpi ne, %1, %c0_i32_0 : i32
    scf.if %2 {
      %cst_67 = arith.constant 0.000000e+00 : f32
      %221 = vector.broadcast %cst_67 : f32 to vector<1x128xf32>
      %c0_68 = arith.constant 0 : index
      %c0_69 = arith.constant 0 : index
      %222 = vector.load %arg8[%c0_68, %c0_69] : memref<1x128xf32, #tpu.memory_space<vmem>>, vector<1x128xf32>
      tpu.vector_store %arg8[%c0_68, %c0_69], %221 {strides = array<i32>} : memref<1x128xf32, #tpu.memory_space<vmem>>, vector<1x128xf32>,
      %cst_70 = arith.constant 0.000000e+00 : f32
      %223 = vector.broadcast %cst_70 : f32 to vector<1x128xf32>
      %c0_71 = arith.constant 0 : index
      %c0_72 = arith.constant 0 : index
      %224 = vector.load %arg9[%c0_71, %c0_72] : memref<1x128xf32, #tpu.memory_space<vmem>>, vector<1x128xf32>
      tpu.vector_store %arg9[%c0_71, %c0_72], %223 {strides = array<i32>} : memref<1x128xf32, #tpu.memory_space<vmem>>, vector<1x128xf32>,
    } else {
    }
    %c0 = arith.constant 0 : index
    %c0_1 = arith.constant 0 : index
    %3 = vector.load %arg1[%c0, %c0_1] : memref<8x128xf32, #tpu.memory_space<vmem>>, vector<8x128xf32>
    %c0_2 = arith.constant 0 : index
    %c0_3 = arith.constant 0 : index
    %4 = vector.load %arg2[%c0_2, %c0_3] : memref<8x128xf32, #tpu.memory_space<vmem>>, vector<8x128xf32>
    %c0_4 = arith.constant 0 : index
    %c0_5 = arith.constant 0 : index
    %5 = vector.load %arg3[%c0_4, %c0_5] : memref<8x128xf32, #tpu.memory_space<vmem>>, vector<8x128xf32>
    %c0_6 = arith.constant 0 : index
    %c0_7 = arith.constant 0 : index
    %6 = vector.load %arg4[%c0_6, %c0_7] : memref<8x128xf32, #tpu.memory_space<vmem>>, vector<8x128xf32>
    %7 = tpu.iota {dimensions = array<i32: 1>} : vector<1x128xi32>
    %c7_i32 = arith.constant 7 : i32
    %8 = vector.broadcast %c7_i32 : i32 to vector<1x128xi32>
    %9 = arith.cmpi slt, %7, %8 : vector<1x128xi32>
    %10 = arith.extui %9 : vector<1x128xi1> to vector<1x128xi32>
    %11 = arith.sitofp %10 : vector<1x128xi32> to vector<1x128xf32>
    %c6_i32 = arith.constant 6 : i32
    %12 = vector.broadcast %c6_i32 : i32 to vector<1x128xi32>
    %13 = arith.cmpi slt, %7, %12 : vector<1x128xi32>
    %14 = arith.extui %13 : vector<1x128xi1> to vector<1x128xi32>
    %15 = arith.sitofp %14 : vector<1x128xi32> to vector<1x128xf32>
    %c127_i32 = arith.constant 127 : i32
    %16 = tpu.dynamic_rotate %3 by %c127_i32 dim 1 : vector<8x128xf32>, i32 -> vector<8x128xf32>
    %c126_i32 = arith.constant 126 : i32
    %17 = tpu.dynamic_rotate %3 by %c126_i32 dim 1 : vector<8x128xf32>, i32 -> vector<8x128xf32>
    %c127_i32_8 = arith.constant 127 : i32
    %18 = tpu.dynamic_rotate %6 by %c127_i32_8 dim 1 : vector<8x128xf32>, i32 -> vector<8x128xf32>
    %c126_i32_9 = arith.constant 126 : i32
    %19 = tpu.dynamic_rotate %6 by %c126_i32_9 dim 1 : vector<8x128xf32>, i32 -> vector<8x128xf32>
    %20 = arith.subf %3, %4 : vector<8x128xf32>
    %21 = arith.mulf %20, %6 : vector<8x128xf32>
    %22 = arith.mulf %21, %21 : vector<8x128xf32>
    %23 = vector.shape_cast %22 : vector<8x128xf32> to vector<1x8x128xf32>
    %cst = arith.constant dense<0.000000e+00> : vector<1xf32>
    %24 = vector.multi_reduction <add>, %23, %cst [1, 2] : vector<1x8x128xf32> to vector<1xf32>
    %25 = vector.shape_cast %24 : vector<1xf32> to vector<1x1x1xf32>
    %26 = vector.extract %25[0, 0, 0] : f32 from vector<1x1x1xf32>
    %27 = vector.shape_cast %6 : vector<8x128xf32> to vector<1x8x128xf32>
    %cst_10 = arith.constant dense<0.000000e+00> : vector<1xf32>
    %28 = vector.multi_reduction <add>, %27, %cst_10 [1, 2] : vector<1x8x128xf32> to vector<1xf32>
    %29 = vector.shape_cast %28 : vector<1xf32> to vector<1x1x1xf32>
    %30 = vector.extract %29[0, 0, 0] : f32 from vector<1x1x1xf32>
    %cst_11 = arith.constant 0.000000e+00 : f32
    %31 = vector.broadcast %cst_11 : f32 to vector<8x128xf32>
    %32 = arith.cmpf ogt, %6, %31 : vector<8x128xf32>
    %c-1_i32 = arith.constant -1 : i32
    %33 = vector.shape_cast %7 : vector<1x128xi32> to vector<1x128xi32>
    %34 = vector.broadcast %33 : vector<1x128xi32> to vector<8x128xi32>
    %35 = vector.broadcast %c-1_i32 : i32 to vector<8x128xi32>
    %36 = arith.select %32, %34, %35 : vector<8x128xi1>, vector<8x128xi32>
    %cst_12 = arith.constant dense<-2147483648> : vector<8xi32>
    %37 = vector.multi_reduction <maxsi>, %36, %cst_12 [1] : vector<8x128xi32> to vector<8xi32>
    %38 = vector.shape_cast %37 : vector<8xi32> to vector<8x1xi32>
    %39 = vector.broadcast %7 : vector<1x128xi32> to vector<8x128xi32>
    %40 = vector.broadcast %38 : vector<8x1xi32> to vector<8x128xi32>
    %41 = arith.cmpi eq, %39, %40 : vector<8x128xi32>
    %c7_i32_13 = arith.constant 7 : i32
    %42 = vector.broadcast %c7_i32_13 : i32 to vector<8x1xi32>
    %43 = arith.cmpi slt, %38, %42 : vector<8x1xi32>
    %cst_14 = arith.constant 1.900000e+02 : f32
    %44 = vector.broadcast %cst_14 : f32 to vector<8x128xf32>
    %45 = arith.cmpf oge, %4, %44 : vector<8x128xf32>
    %46 = vector.broadcast %43 : vector<8x1xi1> to vector<8x128xi1>
    %47 = arith.ori %46, %45 : vector<8x128xi1>
    %48 = arith.andi %41, %47 : vector<8x128xi1>
    %49 = arith.extui %48 : vector<8x128xi1> to vector<8x128xi32>
    %50 = arith.sitofp %49 : vector<8x128xi32> to vector<8x128xf32>
    %cst_15 = arith.constant 1.000000e-07 : f32
    %cst_16 = arith.constant 0.99999988 : f32
    %51 = vector.broadcast %cst_15 : f32 to vector<8x128xf32>
    %52 = arith.maximumf %51, %5 : vector<8x128xf32>
    %53 = vector.broadcast %cst_16 : f32 to vector<8x128xf32>
    %54 = arith.minimumf %53, %52 : vector<8x128xf32>
    %cst_17 = arith.constant 5.000000e-01 : f32
    %55 = vector.broadcast %cst_17 : f32 to vector<8x128xf32>
    %56 = arith.cmpf ogt, %50, %55 : vector<8x128xf32>
    %cst_18 = arith.constant 1.000000e+00 : f32
    %57 = vector.broadcast %cst_18 : f32 to vector<8x128xf32>
    %58 = arith.subf %57, %54 : vector<8x128xf32>
    %59 = arith.select %56, %54, %58 : vector<8x128xi1>, vector<8x128xf32>
    %60 = math.log %59 : vector<8x128xf32>
    %cst_19 = arith.constant 0.000000e+00 : f32
    %61 = vector.broadcast %cst_19 : f32 to vector<8x128xf32>
    %62 = arith.subf %61, %60 : vector<8x128xf32>
    %cst_20 = arith.constant 5.000000e-01 : f32
    %63 = vector.broadcast %cst_20 : f32 to vector<8x128xf32>
    %64 = arith.cmpf ogt, %50, %63 : vector<8x128xf32>
    %cst_21 = arith.constant 5.000000e+00 : f32
    %65 = vector.broadcast %cst_21 : f32 to vector<8x128xf32>
    %66 = arith.select %64, %65, %6 : vector<8x128xi1>, vector<8x128xf32>
    %67 = arith.mulf %62, %66 : vector<8x128xf32>
    %68 = vector.shape_cast %67 : vector<8x128xf32> to vector<1x8x128xf32>
    %cst_22 = arith.constant dense<0.000000e+00> : vector<1xf32>
    %69 = vector.multi_reduction <add>, %68, %cst_22 [1, 2] : vector<1x8x128xf32> to vector<1xf32>
    %70 = vector.shape_cast %69 : vector<1xf32> to vector<1x1x1xf32>
    %71 = vector.extract %70[0, 0, 0] : f32 from vector<1x1x1xf32>
    %72 = vector.shape_cast %66 : vector<8x128xf32> to vector<1x8x128xf32>
    %cst_23 = arith.constant dense<0.000000e+00> : vector<1xf32>
    %73 = vector.multi_reduction <add>, %72, %cst_23 [1, 2] : vector<1x8x128xf32> to vector<1xf32>
    %74 = vector.shape_cast %73 : vector<1xf32> to vector<1x1x1xf32>
    %75 = vector.extract %74[0, 0, 0] : f32 from vector<1x1x1xf32>
    %76 = arith.subf %16, %3 : vector<8x128xf32>
    %77 = arith.mulf %18, %6 : vector<8x128xf32>
    %78 = vector.broadcast %11 : vector<1x128xf32> to vector<8x128xf32>
    %79 = arith.mulf %77, %78 : vector<8x128xf32>
    %80 = vector.shape_cast %79 : vector<8x128xf32> to vector<1x8x128xf32>
    %cst_24 = arith.constant dense<0.000000e+00> : vector<1xf32>
    %81 = vector.multi_reduction <add>, %80, %cst_24 [1, 2] : vector<1x8x128xf32> to vector<1xf32>
    %82 = vector.shape_cast %81 : vector<1xf32> to vector<1x1x1xf32>
    %83 = vector.extract %82[0, 0, 0] : f32 from vector<1x1x1xf32>
    %cst_25 = arith.constant 0.000000e+00 : f32
    %84 = vector.broadcast %cst_25 : f32 to vector<8x128xf32>
    %85 = arith.subf %84, %76 : vector<8x128xf32>
    %cst_26 = arith.constant 0.000000e+00 : f32
    %86 = vector.broadcast %cst_26 : f32 to vector<8x128xf32>
    %87 = arith.maximumf %85, %86 : vector<8x128xf32>
    %88 = arith.mulf %87, %79 : vector<8x128xf32>
    %89 = vector.shape_cast %88 : vector<8x128xf32> to vector<1x8x128xf32>
    %cst_27 = arith.constant dense<0.000000e+00> : vector<1xf32>
    %90 = vector.multi_reduction <add>, %89, %cst_27 [1, 2] : vector<1x8x128xf32> to vector<1xf32>
    %91 = vector.shape_cast %90 : vector<1xf32> to vector<1x1x1xf32>
    %92 = vector.extract %91[0, 0, 0] : f32 from vector<1x1x1xf32>
    %cst_28 = arith.constant 2.000000e+00 : f32
    %93 = vector.broadcast %cst_28 : f32 to vector<8x128xf32>
    %94 = arith.mulf %93, %16 : vector<8x128xf32>
    %95 = arith.subf %17, %94 : vector<8x128xf32>
    %96 = arith.addf %95, %3 : vector<8x128xf32>
    %97 = arith.mulf %19, %18 : vector<8x128xf32>
    %98 = arith.mulf %97, %6 : vector<8x128xf32>
    %99 = vector.broadcast %15 : vector<1x128xf32> to vector<8x128xf32>
    %100 = arith.mulf %98, %99 : vector<8x128xf32>
    %101 = vector.shape_cast %100 : vector<8x128xf32> to vector<1x8x128xf32>
    %cst_29 = arith.constant dense<0.000000e+00> : vector<1xf32>
    %102 = vector.multi_reduction <add>, %101, %cst_29 [1, 2] : vector<1x8x128xf32> to vector<1xf32>
    %103 = vector.shape_cast %102 : vector<1xf32> to vector<1x1x1xf32>
    %104 = vector.extract %103[0, 0, 0] : f32 from vector<1x1x1xf32>
    %105 = math.absf %96 : vector<8x128xf32>
    %106 = arith.mulf %105, %100 : vector<8x128xf32>
    %107 = vector.shape_cast %106 : vector<8x128xf32> to vector<1x8x128xf32>
    %cst_30 = arith.constant dense<0.000000e+00> : vector<1xf32>
    %108 = vector.multi_reduction <add>, %107, %cst_30 [1, 2] : vector<1x8x128xf32> to vector<1xf32>
    %109 = vector.shape_cast %108 : vector<1xf32> to vector<1x1x1xf32>
    %110 = vector.extract %109[0, 0, 0] : f32 from vector<1x1x1xf32>
    %cst_31 = arith.constant 2.000000e+02 : f32
    %111 = vector.broadcast %cst_31 : f32 to vector<8x128xf32>
    %112 = arith.subf %3, %111 : vector<8x128xf32>
    %cst_32 = arith.constant 0.000000e+00 : f32
    %113 = vector.broadcast %cst_32 : f32 to vector<8x128xf32>
    %114 = arith.maximumf %112, %113 : vector<8x128xf32>
    %115 = vector.shape_cast %114 : vector<8x128xf32> to vector<1x8x128xf32>
    %cst_33 = arith.constant dense<0.000000e+00> : vector<1xf32>
    %116 = vector.multi_reduction <add>, %115, %cst_33 [1, 2] : vector<1x8x128xf32> to vector<1xf32>
    %117 = vector.shape_cast %116 : vector<1xf32> to vector<1x1x1xf32>
    %118 = vector.extract %117[0, 0, 0] : f32 from vector<1x1x1xf32>
    %c0_34 = arith.constant 0 : index
    %c0_35 = arith.constant 0 : index
    %119 = vector.load %arg5[%c0_34, %c0_35] : memref<8x1xf32, #tpu.memory_space<vmem>>, vector<8x1xf32>
    %c0_36 = arith.constant 0 : index
    %c0_37 = arith.constant 0 : index
    %120 = vector.load %arg6[%c0_36, %c0_37] : memref<8x1xf32, #tpu.memory_space<vmem>>, vector<8x1xf32>
    %121 = math.absf %119 : vector<8x1xf32>
    %122 = arith.divf %121, %120 : vector<8x1xf32>
    %cst_38 = arith.constant 1.000000e-07 : f32
    %123 = vector.broadcast %cst_38 : f32 to vector<8x1xf32>
    %124 = arith.mulf %122, %123 : vector<8x1xf32>
    %cst_39 = arith.constant 1.000000e-01 : f32
    %125 = vector.broadcast %cst_39 : f32 to vector<8x1xf32>
    %126 = arith.mulf %125, %124 : vector<8x1xf32>
    %127 = vector.broadcast %11 : vector<1x128xf32> to vector<8x128xf32>
    %128 = arith.mulf %6, %127 : vector<8x128xf32>
    %cst_40 = arith.constant dense<0.000000e+00> : vector<8xf32>
    %129 = vector.multi_reduction <add>, %128, %cst_40 [1] : vector<8x128xf32> to vector<8xf32>
    %130 = vector.shape_cast %129 : vector<8xf32> to vector<8x1xf32>
    %cst_41 = arith.constant 1.000000e+00 : f32
    %131 = vector.broadcast %cst_41 : f32 to vector<8x1xf32>
    %132 = arith.maximumf %130, %131 : vector<8x1xf32>
    %133 = arith.mulf %76, %128 : vector<8x128xf32>
    %cst_42 = arith.constant dense<0.000000e+00> : vector<8xf32>
    %134 = vector.multi_reduction <add>, %133, %cst_42 [1] : vector<8x128xf32> to vector<8xf32>
    %135 = vector.shape_cast %134 : vector<8xf32> to vector<8x1xf32>
    %136 = arith.divf %135, %132 : vector<8x1xf32>
    %cst_43 = arith.constant 0.000000e+00 : f32
    %137 = vector.broadcast %cst_43 : f32 to vector<8x1xf32>
    %138 = arith.cmpf ogt, %136, %137 : vector<8x1xf32>
    %139 = arith.extui %138 : vector<8x1xi1> to vector<8x1xi32>
    %140 = arith.sitofp %139 : vector<8x1xi32> to vector<8x1xf32>
    %cst_44 = arith.constant 9.99999993E-9 : f32
    %141 = vector.broadcast %cst_44 : f32 to vector<8x1xf32>
    %142 = arith.maximumf %136, %141 : vector<8x1xf32>
    %143 = math.log %142 : vector<8x1xf32>
    %144 = arith.subf %143, %126 : vector<8x1xf32>
    %145 = arith.mulf %144, %144 : vector<8x1xf32>
    %146 = arith.mulf %145, %140 : vector<8x1xf32>
    %147 = vector.shape_cast %146 : vector<8x1xf32> to vector<1x8x1xf32>
    %cst_45 = arith.constant dense<0.000000e+00> : vector<1xf32>
    %148 = vector.multi_reduction <add>, %147, %cst_45 [1, 2] : vector<1x8x1xf32> to vector<1xf32>
    %149 = vector.shape_cast %148 : vector<1xf32> to vector<1x1x1xf32>
    %150 = vector.extract %149[0, 0, 0] : f32 from vector<1x1x1xf32>
    %151 = vector.shape_cast %140 : vector<8x1xf32> to vector<1x8x1xf32>
    %cst_46 = arith.constant dense<0.000000e+00> : vector<1xf32>
    %152 = vector.multi_reduction <add>, %151, %cst_46 [1, 2] : vector<1x8x1xf32> to vector<1xf32>
    %153 = vector.shape_cast %152 : vector<1xf32> to vector<1x1x1xf32>
    %154 = vector.extract %153[0, 0, 0] : f32 from vector<1x1x1xf32>
    %155 = vector.extract_strided_slice %6 {offsets = [0, 0], sizes = [8, 1], strides = [1, 1]} : vector<8x128xf32> to vector<8x1xf32>
    %156 = vector.shape_cast %155 : vector<8x1xf32> to vector<1x8x1xf32>
    %cst_47 = arith.constant dense<0.000000e+00> : vector<1xf32>
    %157 = vector.multi_reduction <add>, %156, %cst_47 [1, 2] : vector<1x8x1xf32> to vector<1xf32>
    %158 = vector.shape_cast %157 : vector<1xf32> to vector<1x1x1xf32>
    %159 = vector.extract %158[0, 0, 0] : f32 from vector<1x1x1xf32>
    %160 = arith.subf %30, %159 : f32
    %161 = tpu.iota {dimensions = array<i32: 1>} : vector<1x128xi32>
    %c0_48 = arith.constant 0 : index
    %c0_49 = arith.constant 0 : index
    %162 = vector.load %arg8[%c0_48, %c0_49] : memref<1x128xf32, #tpu.memory_space<vmem>>, vector<1x128xf32>
    %cst_50 = arith.constant 0.000000e+00 : f32
    %163 = vector.broadcast %cst_50 : f32 to vector<1x128xf32>
    %c0_i32_51 = arith.constant 0 : i32
    %164 = vector.broadcast %c0_i32_51 : i32 to vector<1x128xi32>
    %165 = arith.cmpi eq, %161, %164 : vector<1x128xi32>
    %166 = vector.broadcast %26 : f32 to vector<1x128xf32>
    %167 = arith.select %165, %166, %163 : vector<1x128xi1>, vector<1x128xf32>
    %c1_i32 = arith.constant 1 : i32
    %168 = vector.broadcast %c1_i32 : i32 to vector<1x128xi32>
    %169 = arith.cmpi eq, %161, %168 : vector<1x128xi32>
    %170 = vector.broadcast %71 : f32 to vector<1x128xf32>
    %171 = arith.select %169, %170, %167 : vector<1x128xi1>, vector<1x128xf32>
    %c2_i32 = arith.constant 2 : i32
    %172 = vector.broadcast %c2_i32 : i32 to vector<1x128xi32>
    %173 = arith.cmpi eq, %161, %172 : vector<1x128xi32>
    %174 = vector.broadcast %92 : f32 to vector<1x128xf32>
    %175 = arith.select %173, %174, %171 : vector<1x128xi1>, vector<1x128xf32>
    %c3_i32 = arith.constant 3 : i32
    %176 = vector.broadcast %c3_i32 : i32 to vector<1x128xi32>
    %177 = arith.cmpi eq, %161, %176 : vector<1x128xi32>
    %178 = vector.broadcast %110 : f32 to vector<1x128xf32>
    %179 = arith.select %177, %178, %175 : vector<1x128xi1>, vector<1x128xf32>
    %c4_i32 = arith.constant 4 : i32
    %180 = vector.broadcast %c4_i32 : i32 to vector<1x128xi32>
    %181 = arith.cmpi eq, %161, %180 : vector<1x128xi32>
    %182 = vector.broadcast %150 : f32 to vector<1x128xf32>
    %183 = arith.select %181, %182, %179 : vector<1x128xi1>, vector<1x128xf32>
    %c5_i32 = arith.constant 5 : i32
    %184 = vector.broadcast %c5_i32 : i32 to vector<1x128xi32>
    %185 = arith.cmpi eq, %161, %184 : vector<1x128xi32>
    %186 = vector.broadcast %118 : f32 to vector<1x128xf32>
    %187 = arith.select %185, %186, %183 : vector<1x128xi1>, vector<1x128xf32>
    %188 = arith.addf %162, %187 : vector<1x128xf32>
    %c0_52 = arith.constant 0 : index
    %c0_53 = arith.constant 0 : index
    %189 = vector.load %arg8[%c0_52, %c0_53] : memref<1x128xf32, #tpu.memory_space<vmem>>, vector<1x128xf32>
    tpu.vector_store %arg8[%c0_52, %c0_53], %188 {strides = array<i32>} : memref<1x128xf32, #tpu.memory_space<vmem>>, vector<1x128xf32>,
    %c0_54 = arith.constant 0 : index
    %c0_55 = arith.constant 0 : index
    %190 = vector.load %arg9[%c0_54, %c0_55] : memref<1x128xf32, #tpu.memory_space<vmem>>, vector<1x128xf32>
    %cst_56 = arith.constant 0.000000e+00 : f32
    %191 = vector.broadcast %cst_56 : f32 to vector<1x128xf32>
    %c0_i32_57 = arith.constant 0 : i32
    %192 = vector.broadcast %c0_i32_57 : i32 to vector<1x128xi32>
    %193 = arith.cmpi eq, %161, %192 : vector<1x128xi32>
    %194 = vector.broadcast %30 : f32 to vector<1x128xf32>
    %195 = arith.select %193, %194, %191 : vector<1x128xi1>, vector<1x128xf32>
    %c1_i32_58 = arith.constant 1 : i32
    %196 = vector.broadcast %c1_i32_58 : i32 to vector<1x128xi32>
    %197 = arith.cmpi eq, %161, %196 : vector<1x128xi32>
    %198 = vector.broadcast %75 : f32 to vector<1x128xf32>
    %199 = arith.select %197, %198, %195 : vector<1x128xi1>, vector<1x128xf32>
    %c2_i32_59 = arith.constant 2 : i32
    %200 = vector.broadcast %c2_i32_59 : i32 to vector<1x128xi32>
    %201 = arith.cmpi eq, %161, %200 : vector<1x128xi32>
    %202 = vector.broadcast %83 : f32 to vector<1x128xf32>
    %203 = arith.select %201, %202, %199 : vector<1x128xi1>, vector<1x128xf32>
    %c3_i32_60 = arith.constant 3 : i32
    %204 = vector.broadcast %c3_i32_60 : i32 to vector<1x128xi32>
    %205 = arith.cmpi eq, %161, %204 : vector<1x128xi32>
    %206 = vector.broadcast %104 : f32 to vector<1x128xf32>
    %207 = arith.select %205, %206, %203 : vector<1x128xi1>, vector<1x128xf32>
    %c4_i32_61 = arith.constant 4 : i32
    %208 = vector.broadcast %c4_i32_61 : i32 to vector<1x128xi32>
    %209 = arith.cmpi eq, %161, %208 : vector<1x128xi32>
    %210 = vector.broadcast %154 : f32 to vector<1x128xf32>
    %211 = arith.select %209, %210, %207 : vector<1x128xi1>, vector<1x128xf32>
    %c6_i32_62 = arith.constant 6 : i32
    %212 = vector.broadcast %c6_i32_62 : i32 to vector<1x128xi32>
    %213 = arith.cmpi eq, %161, %212 : vector<1x128xi32>
    %214 = vector.broadcast %160 : f32 to vector<1x128xf32>
    %215 = arith.select %213, %214, %211 : vector<1x128xi1>, vector<1x128xf32>
    %216 = arith.addf %190, %215 : vector<1x128xf32>
    %c0_63 = arith.constant 0 : index
    %c0_64 = arith.constant 0 : index
    %217 = vector.load %arg9[%c0_63, %c0_64] : memref<1x128xf32, #tpu.memory_space<vmem>>, vector<1x128xf32>
    tpu.vector_store %arg9[%c0_63, %c0_64], %216 {strides = array<i32>} : memref<1x128xf32, #tpu.memory_space<vmem>>, vector<1x128xf32>,
    %c0_i32_65 = arith.constant 0 : i32
    %218 = arith.cmpi eq, %arg0, %c0_i32_65 : i32
    %219 = arith.extui %218 : i1 to i32
    %c0_i32_66 = arith.constant 0 : i32
    %220 = arith.cmpi ne, %219, %c0_i32_66 : i32
    scf.if %220 {
      %c0_67 = arith.constant 0 : index
      %c0_68 = arith.constant 0 : index
      %221 = vector.load %arg8[%c0_67, %c0_68] : memref<1x128xf32, #tpu.memory_space<vmem>>, vector<1x128xf32>
      %c0_69 = arith.constant 0 : index
      %c0_70 = arith.constant 0 : index
      %222 = vector.load %arg9[%c0_69, %c0_70] : memref<1x128xf32, #tpu.memory_space<vmem>>, vector<1x128xf32>
      %c5_i32_71 = arith.constant 5 : i32
      %223 = vector.broadcast %c5_i32_71 : i32 to vector<1x128xi32>
      %224 = arith.cmpi eq, %161, %223 : vector<1x128xi32>
      %cst_72 = arith.constant 1.600000e+02 : f32
      %225 = vector.broadcast %cst_72 : f32 to vector<1x128xf32>
      %226 = arith.select %224, %225, %222 : vector<1x128xi1>, vector<1x128xf32>
      %c6_i32_73 = arith.constant 6 : i32
      %227 = vector.broadcast %c6_i32_73 : i32 to vector<1x128xi32>
      %228 = arith.cmpi eq, %161, %227 : vector<1x128xi32>
      %229 = arith.extui %228 : vector<1x128xi1> to vector<1x128xi32>
      %230 = arith.sitofp %229 : vector<1x128xi32> to vector<1x128xf32>
      %231 = arith.mulf %222, %230 : vector<1x128xf32>
      %232 = vector.shape_cast %231 : vector<1x128xf32> to vector<1x1x128xf32>
      %cst_74 = arith.constant dense<0.000000e+00> : vector<1xf32>
      %233 = vector.multi_reduction <add>, %232, %cst_74 [1, 2] : vector<1x1x128xf32> to vector<1xf32>
      %234 = vector.shape_cast %233 : vector<1xf32> to vector<1x1x1xf32>
      %235 = vector.extract %234[0, 0, 0] : f32 from vector<1x1x1xf32>
      %cst_75 = arith.constant 0.000000e+00 : f32
      %236 = arith.cmpf ogt, %235, %cst_75 : f32
      %cst_76 = arith.constant 0.000000e+00 : f32
      %237 = vector.broadcast %cst_76 : f32 to vector<1x128xf32>
      %238 = arith.cmpf ogt, %226, %237 : vector<1x128xf32>
      %c4_i32_77 = arith.constant 4 : i32
      %239 = vector.broadcast %c4_i32_77 : i32 to vector<1x128xi32>
      %240 = arith.cmpi ne, %161, %239 : vector<1x128xi32>
      %241 = vector.broadcast %236 : i1 to vector<1x128xi1>
      %242 = arith.ori %240, %241 : vector<1x128xi1>
      %243 = arith.andi %238, %242 : vector<1x128xi1>
      %244 = arith.extui %243 : vector<1x128xi1> to vector<1x128xi32>
      %245 = arith.sitofp %244 : vector<1x128xi32> to vector<1x128xf32>
      %246 = arith.mulf %245, %221 : vector<1x128xf32>
      %cst_78 = arith.constant 1.000000e+00 : f32
      %247 = vector.broadcast %cst_78 : f32 to vector<1x128xf32>
      %248 = arith.maximumf %226, %247 : vector<1x128xf32>
      %249 = arith.divf %246, %248 : vector<1x128xf32>
      %cst_79 = arith.constant 0.000000e+00 : f32
      %250 = vector.broadcast %cst_79 : f32 to vector<1x128xf32>
      %c0_i32_80 = arith.constant 0 : i32
      %251 = vector.broadcast %c0_i32_80 : i32 to vector<1x128xi32>
      %252 = arith.cmpi eq, %161, %251 : vector<1x128xi32>
      %cst_81 = arith.constant 1.000000e+00 : f32
      %253 = vector.broadcast %cst_81 : f32 to vector<1x128xf32>
      %254 = arith.select %252, %253, %250 : vector<1x128xi1>, vector<1x128xf32>
      %c1_i32_82 = arith.constant 1 : i32
      %255 = vector.broadcast %c1_i32_82 : i32 to vector<1x128xi32>
      %256 = arith.cmpi eq, %161, %255 : vector<1x128xi32>
      %cst_83 = arith.constant 5.000000e-01 : f32
      %257 = vector.broadcast %cst_83 : f32 to vector<1x128xf32>
      %258 = arith.select %256, %257, %254 : vector<1x128xi1>, vector<1x128xf32>
      %c2_i32_84 = arith.constant 2 : i32
      %259 = vector.broadcast %c2_i32_84 : i32 to vector<1x128xi32>
      %260 = arith.cmpi eq, %161, %259 : vector<1x128xi32>
      %cst_85 = arith.constant 2.000000e-01 : f32
      %261 = vector.broadcast %cst_85 : f32 to vector<1x128xf32>
      %262 = arith.select %260, %261, %258 : vector<1x128xi1>, vector<1x128xf32>
      %c3_i32_86 = arith.constant 3 : i32
      %263 = vector.broadcast %c3_i32_86 : i32 to vector<1x128xi32>
      %264 = arith.cmpi eq, %161, %263 : vector<1x128xi32>
      %cst_87 = arith.constant 1.000000e-01 : f32
      %265 = vector.broadcast %cst_87 : f32 to vector<1x128xf32>
      %266 = arith.select %264, %265, %262 : vector<1x128xi1>, vector<1x128xf32>
      %c4_i32_88 = arith.constant 4 : i32
      %267 = vector.broadcast %c4_i32_88 : i32 to vector<1x128xi32>
      %268 = arith.cmpi eq, %161, %267 : vector<1x128xi32>
      %cst_89 = arith.constant 3.000000e-01 : f32
      %269 = vector.broadcast %cst_89 : f32 to vector<1x128xf32>
      %270 = arith.select %268, %269, %266 : vector<1x128xi1>, vector<1x128xf32>
      %c5_i32_90 = arith.constant 5 : i32
      %271 = vector.broadcast %c5_i32_90 : i32 to vector<1x128xi32>
      %272 = arith.cmpi eq, %161, %271 : vector<1x128xi32>
      %cst_91 = arith.constant 1.000000e+00 : f32
      %273 = vector.broadcast %cst_91 : f32 to vector<1x128xf32>
      %274 = arith.select %272, %273, %270 : vector<1x128xi1>, vector<1x128xf32>
      %275 = arith.mulf %249, %274 : vector<1x128xf32>
      %276 = vector.shape_cast %275 : vector<1x128xf32> to vector<1x1x128xf32>
      %cst_92 = arith.constant dense<0.000000e+00> : vector<1xf32>
      %277 = vector.multi_reduction <add>, %276, %cst_92 [1, 2] : vector<1x1x128xf32> to vector<1xf32>
      %278 = vector.shape_cast %277 : vector<1xf32> to vector<1x1x1xf32>
      %279 = vector.extract %278[0, 0, 0] : f32 from vector<1x1x1xf32>
      %c6_i32_93 = arith.constant 6 : i32
      %280 = vector.broadcast %c6_i32_93 : i32 to vector<1x128xi32>
      %281 = arith.cmpi eq, %161, %280 : vector<1x128xi32>
      %cst_94 = arith.constant 0.000000e+00 : f32
      %282 = vector.broadcast %279 : f32 to vector<1x128xf32>
      %283 = vector.broadcast %cst_94 : f32 to vector<1x128xf32>
      %284 = arith.select %281, %282, %283 : vector<1x128xi1>, vector<1x128xf32>
      %285 = arith.addf %249, %284 : vector<1x128xf32>
      %286 = vector.shape_cast %285 : vector<1x128xf32> to vector<1x128xf32>
      %287 = vector.broadcast %286 : vector<1x128xf32> to vector<8x128xf32>
      %c0_95 = arith.constant 0 : index
      %c0_96 = arith.constant 0 : index
      %288 = vector.load %arg7[%c0_95, %c0_96] : memref<8x128xf32, #tpu.memory_space<vmem>>, vector<8x128xf32>
      tpu.vector_store %arg7[%c0_95, %c0_96], %287 {strides = array<i32>} : memref<8x128xf32, #tpu.memory_space<vmem>>, vector<8x128xf32>,
    } else {
    }
    return
  }
  func.func @transform_0(%arg0: i32) -> (i32, i32) {
    %c0_i32 = arith.constant 0 : i32
    %c0_i32_0 = arith.constant 0 : i32
    return %arg0, %c0_i32 : i32, i32
  }
  func.func @transform_1(%arg0: i32) -> (i32, i32) {
    %c0_i32 = arith.constant 0 : i32
    %c0_i32_0 = arith.constant 0 : i32
    return %arg0, %c0_i32 : i32, i32
  }
  func.func @transform_2(%arg0: i32) -> (i32, i32) {
    %c0_i32 = arith.constant 0 : i32
    %c0_i32_0 = arith.constant 0 : i32
    return %arg0, %c0_i32 : i32, i32
  }
  func.func @transform_3(%arg0: i32) -> (i32, i32) {
    %c0_i32 = arith.constant 0 : i32
    %c0_i32_0 = arith.constant 0 : i32
    return %arg0, %c0_i32 : i32, i32
  }
  func.func @transform_4(%arg0: i32) -> (i32, i32) {
    %c0_i32 = arith.constant 0 : i32
    %c0_i32_0 = arith.constant 0 : i32
    return %arg0, %c0_i32 : i32, i32
  }
  func.func @transform_5(%arg0: i32) -> (i32, i32) {
    %c0_i32 = arith.constant 0 : i32
    %c0_i32_0 = arith.constant 0 : i32
    return %arg0, %c0_i32 : i32, i32
  }
  func.func @transform_6(%arg0: i32) -> (i32, i32) {
    %c0_i32 = arith.constant 0 : i32
    %c0_i32_0 = arith.constant 0 : i32
    %c0_i32_1 = arith.constant 0 : i32
    return %c0_i32, %c0_i32_0 : i32, i32
  }
}

</mosaic_0001>

<bundles_post_ra>
// kernel: tpu_custom_call.1
= control target key start
LH: loop header
LB: loop body
LE: loop exit
PB: predicated region body
PF: predicated region fallthrough
CT: control target
= control target key end

     0   :  { %11 = vsyncpa [#allocation5], 0  ;;  %s637_s0 = inlined_call_operand.vmem [shape: f32[8,128], index: 0, kind: input, shape index: {}]   ;;  %s638_s1 = inlined_call_operand.vmem [shape: f32[8,128], index: 1, kind: input, shape index: {}]   ;;  %s639_s2 = inlined_call_operand.vmem [shape: f32[8,128], index: 2, kind: input, shape index: {}]   ;;  %s640_s3 = inlined_call_operand.hbm [shape: f32[8,128], index: 3, kind: input, shape index: {}]   ;;  %s641_s4 = inlined_call_operand.vmem [shape: f32[8,1], index: 4, kind: input, shape index: {}]   ;;  %s642_s5 = inlined_call_operand.vmem [shape: f32[8,1], index: 5, kind: input, shape index: {}]   ;;  %s643_s6 = inlined_call_operand.hbm [shape: f32[8,128], index: 6, kind: output, shape index: {}]  }
   0x1   :  { %12 = vsyncpa [#allocation6], 0  ;;  %s463_s21 = smov [#allocation4]   ;;  %s415_s25 = scalar_lea.hbm %s640_s3, 128 }
   0x2   :  { %s25_s22 = sshll.u32 %s463_s21, 4  ;;  %p416_p0 = scmp.ne.s32.totalorder %s640_s3, %s415_s25  ;;  %s26_s22 = int_to_ptr.vmem [resolvable:$true] %s25_s22 }
   0x3   :  { %p419_p1 = scmp.lt.u32.totalorder %s415_s25, %s640_s3 }
   0x5   :  { %p421_p2 = pnand %p419_p1, %p416_p0 }
   0x7   :  { %424 = shalt.err (!%p421_p2)
}
   0x8   :  { %s425_s30 = scalar_lea.vmem %s26_s22, 128  ;;  %p430_p4 = scmp.lt.s32.totalorder %s26_s22, %s26_s22 }
   0x9   :  { %p426_p3 = scmp.ne.s32.totalorder %s26_s22, %s425_s30  ;;  %p431_p5 = scmp.lt.s32.totalorder %s425_s30, %s425_s30 }
   0xb   :  { %p432_p6 = por %p431_p5, %p430_p4 }
   0xd   :  { %p433_p7 = pnand %p432_p6, %p426_p3 }
   0xf   :  { %436 = shalt.err (!%p433_p7)
}
  0x10   :  { %28 = dma.hbm_to_vmem [thread:$0]  %s640_s3, 128, %s26_s22, [#allocation5]  }
  0x11   :  { %459 = dma.done.wait [#allocation5], 128  }
  0x12   :  { %460 = vsyncadd [#allocation5], 4294967168  ;;  %v46_v0 = vlaneseq  ;;  %v464_v1 = vmov 0.0   ;;  %v522_v4 = vld [vmem:[#allocation4] sm:$0xff]  ;;  %s465_s10 = smov 126   ;;  %s466_s11 = smov 127  }
  0x13   :  { %40 = vst [vmem:[#allocation2] sm:$0x1] %v464_v1  ;;  %41 = vst [vmem:[#allocation3] sm:$0x1] %v464_v1  ;;  %vm83_vm1 = vcmp.gt.f32.partialorder %v522_v4, 0.0  ;;  %v530_v9 = vld [vmem:[%s637_s0] sm:$0xff] }
  0x14   :  { %v518_v2 = vand.u32 127, %v46_v0  ;;  %v43_v17 = vld [vmem:[%s638_s1] sm:$0xff]  ;;  %v368_v56 = vadd.f32 -200.0, %v530_v9  ;;  %vm222_vm11 = vcmask 7168   ;;  %s467_s7 = smov [#allocation7]  }
  0x15   :  { %v62_v18 = vsub.f32 %v530_v9, %v43_v17  ;;  %v198_v29 = vld [vmem:[%s642_s5] sm:$0xff]  ;;  %vm101_vm4 = vcmp.ge.f32.partialorder %v43_v17, 190.0  ;;  %v243_v17 = vsel %vm222_vm11, %v522_v4, 0.0  ;;  %s356_s8 = sshll.u32 %s467_s7, 4  ;;  %s357_s8 = int_to_ptr.vmem [resolvable:$true] %s356_s8 }
  0x16   :  { %vm48_vm0 = vcmp.lt.s32.totalorder %v518_v2, 7  ;;  %v84_v6 = vsel %vm83_vm1, %v518_v2, 4294967295  ;;  %v44_v31 = vld [vmem:[%s639_s2] sm:$0xff]  ;;  %vm51_vm3 = vcmp.lt.s32.totalorder %v518_v2, 6  ;;  %vm255_vm12 = vcmp.eq.s32.totalorder %v518_v2, 0  ;;  %s437_s3 = scalar_lea.vmem %s357_s8, 128  ;;  %p442_p10 = scmp.lt.s32.totalorder %s357_s8, %s357_s8 }
  0x17   :  { %v365_v3 = vsel %vm48_vm0, 1.0, %v464_v1  ;;  %v86_v7 = vshra.s32 %v84_v6, 16  ;;  %v85_v12 = vand.u32 65535, %v84_v6  ;;  %v63_v20 = vmul.f32 %v62_v18, %v522_v4  ;;  %v197_v32 = vld [vmem:[%s641_s4] sm:$0xff]  ;;  %p438_p9 = scmp.ne.s32.totalorder %s357_s8, %s437_s3  ;;  %p443_p11 = scmp.lt.s32.totalorder %s437_s3, %s437_s3 }
  0x18   :  { %v204_v5 = vmul.f32 %v365_v3, %v522_v4  ;;  %v108_v38 = vmax.f32 %v44_v31, 1e-07  ;;  %v199_v39 = vand.u32 2147483647, %v197_v32  ;;  %v366_v52 = vsel %vm51_vm3, 1.0, %v464_v1 }
  0x19   :  { %v88_v8 = vcvt.s32.f32 %v86_v7  ;;  %v87_v15 = vcvt.s32.f32 %v85_v12  ;;  %v64_v22 = vmul.f32 %v63_v20, %v63_v20  ;;  %vm258_vm13 = vcmp.eq.s32.totalorder %v518_v2, 1  ;;  %p444_p12 = por %p443_p11, %p442_p10 }
  0x1a   :  { %205 = vadd.xlane.f32.xlu1 %v204_v5  ;;  %v109_v46 = vmin.f32 %v108_v38, 0.9999999  ;;  %vm261_vm14 = vcmp.eq.s32.totalorder %v518_v2, 2  ;;  %vm264_vm15 = vcmp.eq.s32.totalorder %v518_v2, 3  ;;  %vm267_vm0 = vcmp.eq.s32.totalorder %v518_v2, 4 }
  0x1b   :  { %89 = vmax.xlane.f32.xlu0 %v88_v8  ;;  %vm270_vm1 = vcmp.eq.s32.totalorder %v518_v2, 5  ;;  %vm300_vm3 = vcmask 1040384   ;;  %p445_p13 = pnand %p444_p12, %p438_p9 }
  0x1c   :  { %v111_v53 = vsub.f32 1.0, %v109_v46 }
  0x2b   :  { %56 = vrot.lane.b32.xlu1 %v530_v9, %s465_s10 }
  0x31   :  { %54 = vrot.lane.b32.xlu0 %v530_v9, %s466_s11 }
  0x35   :  { %58 = vrot.lane.b32.xlu0 %v522_v4, %s466_s11 }
  0x54   :  { %65 = vadd.xlane.f32.xlu0 %v64_v22 }
  0xa7   :  { %v206_v27 = vpop.xlane.xlu1 %205 }
  0xa8   :  { %v90_v10 = vpop.xlane.xlu0 %89  ;;  %v207_v28 = vmax.f32 %v206_v27, 1.0 }
  0xa9   :  { %vm91_vm2 = vcmp.eq.f32.partialorder %v88_v8, %v90_v10  ;;  %v96_v35 = vcvt.f32.s32 %v90_v10 }
  0xaa   :  { %v92_v16 = vsel %vm91_vm2, %v87_v15, -inf  ;;  %405 = vrcp.f32 %v207_v28  ;;  %vm286_vm2 = vcmp.eq.s32.totalorder %v518_v2, 6 }
  0xab   :  { %407 = vrcp.f32 %v198_v29  ;;  %v57_v30 = vpop.permute.xlu1 %56  ;;  %v97_v43 = vshll.u32 %v96_v35, 16 }
  0xac   :  { %v55_v11 = vpop.permute.xlu0 %54 }
  0xad   :  { %v136_v13 = vsub.f32 %v55_v11, %v530_v9  ;;  %v160_v36 = vmul.f32 2.0, %v55_v11 }
  0xaf   :  { %v208_v14 = vmul.f32 %v204_v5, %v136_v13  ;;  %v148_v24 = vsub.f32 0.0, %v136_v13  ;;  %v161_v44 = vsub.f32 %v57_v30, %v160_v36 }
  0xb0   :  { %v59_v19 = vpop.permute.xlu0 %58 }
  0xb1   :  { %209 = vadd.xlane.f32.xlu1 %v208_v14  ;;  %v137_v21 = vmul.f32 %v59_v19, %v522_v4  ;;  %v149_v25 = vmax.f32 %v148_v24, 0.0  ;;  %v162_v50 = vadd.f32 %v161_v44, %v530_v9 }
  0xb3   :  { %v138_v23 = vmul.f32 %v365_v3, %v137_v21  ;;  %v175_v58 = vand.u32 2147483647, %v162_v50  ;;  %v187_v3 = vmax.f32 %v368_v56, 0.0 }
  0xb4   :  { %v406_v33 = vpop.eup %405 }
  0xb5   :  { %93 = vmax.xlane.f32.xlu1 %v92_v16  ;;  %139 = vadd.xlane.f32.xlu0 %v138_v23  ;;  %v150_v26 = vmul.f32 %v149_v25, %v138_v23  ;;  %v408_v40 = vpop.eup %407 }
  0xb6   :  { %v201_v47 = vmul.f32 %v408_v40, %v199_v39 }
  0xb8   :  { %v202_v54 = vmul.f32 1e-07, %v201_v47 }
  0xba   :  { %v203_v61 = vmul.f32 0.1, %v202_v54 }
  0xc6   :  { %60 = vrot.lane.b32.xlu1 %v522_v4, %s465_s10 }
  0xe1   :  { %v66_v7 = vpop.xlane.xlu0 %65 }
  0xe2   :  { %v67_v9 = vrot.slane %v66_v7, 4 }
  0xe4   :  { %v68_v13 = vadd.f32 %v67_v9, %v66_v7 }
  0xe6   :  { %v69_v15 = vrot.slane %v68_v13, 2 }
  0xea   :  { %74 = vadd.xlane.f32.xlu1 %v522_v4 }
  0xee   :  { %151 = vadd.xlane.f32.xlu1 %v150_v26 }
 0x13e   :  { %v210_v34 = vpop.xlane.xlu1 %209 }
 0x13f   :  { %v212_v37 = vmul.f32 %v406_v33, %v210_v34 }
 0x141   :  { %v216_v41 = vmax.f32 %v212_v37, 1e-08  ;;  %vm213_vm10 = vcmp.gt.f32.partialorder %v212_v37, 0.0 }
 0x142   :  { %v94_v42 = vpop.xlane.xlu1 %93  ;;  %v369_v10 = vsel %vm213_vm10, 1.0, %v464_v1 }
 0x143   :  { %409 = vlog2.f32 %v216_v41  ;;  %v95_v45 = vcvt.f32.s32 %v94_v42  ;;  %v233_v24 = vsel %vm222_vm11, %v369_v10, 0.0 }
 0x145   :  { %v98_v48 = vadd.s32 %v97_v43, %v95_v45 }
 0x146   :  { %v61_v49 = vpop.permute.xlu1 %60 }
 0x147   :  { %vm100_vm5 = vcmp.lt.s32.totalorder %v98_v48, 7  ;;  %v163_v51 = vmul.f32 %v61_v49, %v59_v19  ;;  %vm99_vm6 = vcmp.eq.s32.totalorder %v518_v2, %v98_v48  ;;  %v70_v19 = vadd.f32 %v69_v15, %v68_v13 }
 0x148   :  { %vm104_vm7 = vmor %vm100_vm5, %vm101_vm4  ;;  %vm313_vm4 = vcmp.ne.s32.totalorder %v518_v2, 4 }
 0x149   :  { %v164_v55 = vmul.f32 %v163_v51, %v522_v4  ;;  %vm105_vm8 = vmand %vm99_vm6, %vm104_vm7  ;;  %v71_v21 = vrot.slane %v70_v19, 1 }
 0x14a   :  { %v367_v57 = vsel %vm105_vm8, 1.0, %v464_v1 }
 0x14b   :  { %v165_v59 = vmul.f32 %v366_v52, %v164_v55  ;;  %vm110_vm9 = vcmp.gt.f32.partialorder %v367_v57, 0.5  ;;  %v72_v23 = vadd.f32 %v71_v21, %v70_v19 }
 0x14c   :  { %v112_v60 = vsel %vm110_vm9, %v109_v46, %v111_v53  ;;  %v116_v11 = vsel %vm110_vm9, 5.0, %v522_v4  ;;  %v140_v4 = vpop.xlane.xlu0 %139 }
 0x14d   :  { %v410_v62 = vpop.eup %409  ;;  %166 = vadd.xlane.f32.xlu0 %v165_v59  ;;  %v176_v63 = vmul.f32 %v175_v58, %v165_v59  ;;  %411 = vlog2.f32 %v112_v60  ;;  %372 = vpush %v72_v23  ;;  %v141_v38 = vrot.slane %v140_v4, 4 }
 0x14e   :  { %v218_v5 = vmul.f32 0.6931472, %v410_v62 }
 0x14f   :  { %177 = vadd.xlane.f32.xlu1 %v176_v63  ;;  %v142_v44 = vadd.f32 %v141_v38, %v140_v4 }
 0x150   :  { %v219_v6 = vsub.f32 %v218_v5, %v203_v61 }
 0x151   :  { %188 = vadd.xlane.f32.xlu0 %v187_v3  ;;  %v143_v54 = vrot.slane %v142_v44, 2 }
 0x152   :  { %v220_v8 = vmul.f32 %v219_v6, %v219_v6 }
 0x154   :  { %v221_v12 = vmul.f32 %v369_v10, %v220_v8  ;;  %v144_v8 = vadd.f32 %v143_v54, %v142_v44 }
 0x155   :  { %127 = vadd.xlane.f32.xlu0 %v116_v11 }
 0x156   :  { %v223_v14 = vsel %vm222_vm11, %v221_v12, 0.0  ;;  %v145_v19 = vrot.slane %v144_v8, 1 }
 0x157   :  { %v412_v16 = vpop.eup %411  ;;  %224 = vadd.xlane.f32.xlu1 %v223_v14 }
 0x158   :  { %v114_v18 = vmul.f32 0.6931472, %v412_v16 }
 0x15a   :  { %v115_v20 = vsub.f32 0.0, %v114_v18 }
 0x15b   :  { %244 = vadd.xlane.f32.xlu1 %v243_v17 }
 0x15c   :  { %v117_v22 = vmul.f32 %v116_v11, %v115_v20 }
 0x15e   :  { %118 = vadd.xlane.f32.xlu0 %v117_v22 }
 0x162   :  { %234 = vadd.xlane.f32.xlu0 %v233_v24 }
 0x177   :  { %v75_v25 = vpop.xlane.xlu1 %74 }
 0x178   :  { %v76_v26 = vrot.slane %v75_v25, 4 }
 0x17a   :  { %v77_v27 = vadd.f32 %v76_v26, %v75_v25 }
 0x17b   :  { %v152_v33 = vpop.xlane.xlu1 %151 }
 0x17c   :  { %v78_v28 = vrot.slane %v77_v27, 2  ;;  %v153_v40 = vrot.slane %v152_v33, 4 }
 0x17e   :  { %v79_v29 = vadd.f32 %v78_v28, %v77_v27  ;;  %v154_v47 = vadd.f32 %v153_v40, %v152_v33  ;;  %s373_s2 = spop %372 }
 0x17f   :  { %v256_v40 = vstv %s373_s2 }
 0x180   :  { %v80_v30 = vrot.slane %v79_v29, 1  ;;  %v155_v57 = vrot.slane %v154_v47, 2 }
 0x182   :  { %v81_v31 = vadd.f32 %v80_v30, %v79_v29  ;;  %v156_v10 = vadd.f32 %v155_v57, %v154_v47  ;;  %v146_v29 = vadd.f32 %v145_v19, %v144_v8  ;;  %v370_v8 = vsel %vm286_vm2, 1.0, %v464_v1 }
 0x184   :  { %374 = vpush %v81_v31  ;;  %v157_v21 = vrot.slane %v156_v10, 1 }
 0x186   :  { %v158_v4 = vadd.f32 %v157_v21, %v156_v10 }
 0x1b5   :  { %s565_s4 = spop %374 }
 0x1da   :  { %v167_v32 = vpop.xlane.xlu0 %166 }
 0x1db   :  { %v168_v41 = vrot.slane %v167_v32, 4 }
 0x1dc   :  { %v178_v35 = vpop.xlane.xlu1 %177 }
 0x1dd   :  { %v179_v42 = vrot.slane %v178_v35, 4  ;;  %v169_v49 = vadd.f32 %v168_v41, %v167_v32  ;;  %v276_v41 = vstv %s565_s4 }
 0x1de   :  { %v189_v34 = vpop.xlane.xlu0 %188  ;;  %v277_v44 = vsel %vm255_vm12, %v276_v41, 0.0 }
 0x1df   :  { %v190_v45 = vrot.slane %v189_v34, 4  ;;  %v180_v50 = vadd.f32 %v179_v42, %v178_v35  ;;  %v170_v59 = vrot.slane %v169_v49, 2  ;;  %v257_v42 = vsel %vm255_vm12, %v256_v40, 0.0 }
 0x1e1   :  { %v191_v55 = vadd.f32 %v190_v45, %v189_v34  ;;  %v181_v61 = vrot.slane %v180_v50, 2  ;;  %v171_v13 = vadd.f32 %v170_v59, %v169_v49 }
 0x1e2   :  { %v128_v36 = vpop.xlane.xlu0 %127 }
 0x1e3   :  { %v129_v37 = vrot.slane %v128_v36, 4  ;;  %v192_v5 = vrot.slane %v191_v55, 2  ;;  %v182_v16 = vadd.f32 %v181_v61, %v180_v50  ;;  %v172_v24 = vrot.slane %v171_v13, 1 }
 0x1e4   :  { %v225_v39 = vpop.xlane.xlu1 %224 }
 0x1e5   :  { %v130_v43 = vadd.f32 %v129_v37, %v128_v36  ;;  %v226_v48 = vrot.slane %v225_v39, 4  ;;  %v193_v20 = vadd.f32 %v192_v5, %v191_v55  ;;  %v183_v27 = vrot.slane %v182_v16, 1 }
 0x1e6   :  { %v173_v33 = vadd.f32 %v172_v24, %v171_v13 }
 0x1e7   :  { %v131_v51 = vrot.slane %v130_v43, 2  ;;  %v227_v58 = vadd.f32 %v226_v48, %v225_v39  ;;  %v194_v30 = vrot.slane %v193_v20, 1  ;;  %v184_v34 = vadd.f32 %v183_v27, %v182_v16 }
 0x1e8   :  { %v245_v46 = vpop.xlane.xlu1 %244 }
 0x1e9   :  { %v246_v52 = vrot.slane %v245_v46, 4  ;;  %v132_v3 = vadd.f32 %v131_v51, %v130_v43  ;;  %v228_v9 = vrot.slane %v227_v58, 2  ;;  %v195_v36 = vadd.f32 %v194_v30, %v193_v20 }
 0x1ea   :  { %v325_v20 = vsel %vm255_vm12, 1.0, %v464_v1 }
 0x1eb   :  { %v119_v53 = vpop.xlane.xlu0 %118  ;;  %v247_v62 = vadd.f32 %v246_v52, %v245_v46  ;;  %v133_v15 = vrot.slane %v132_v3, 1  ;;  %v229_v22 = vadd.f32 %v228_v9, %v227_v58 }
 0x1ec   :  { %v120_v56 = vrot.slane %v119_v53, 4 }
 0x1ed   :  { %v248_v14 = vrot.slane %v247_v62, 2  ;;  %v134_v26 = vadd.f32 %v133_v15, %v132_v3  ;;  %v230_v32 = vrot.slane %v229_v22, 1  ;;  %v275_v3 = vld [vmem:[#allocation3] sm:$0x1] }
 0x1ee   :  { %v121_v60 = vadd.f32 %v120_v56, %v119_v53  ;;  %v254_v56 = vld [vmem:[#allocation2] sm:$0x1] }
 0x1ef   :  { %v235_v63 = vpop.xlane.xlu0 %234  ;;  %v249_v28 = vadd.f32 %v248_v14, %v247_v62  ;;  %v231_v38 = vadd.f32 %v230_v32, %v229_v22  ;;  %v326_v22 = vsel %vm258_vm13, 0.5, %v325_v20 }
 0x1f0   :  { %v122_v6 = vrot.slane %v121_v60, 2  ;;  %v236_v7 = vrot.slane %v235_v63, 4 }
 0x1f1   :  { %v250_v35 = vrot.slane %v249_v28, 1 }
 0x1f2   :  { %v237_v11 = vadd.f32 %v236_v7, %v235_v63  ;;  %v123_v12 = vadd.f32 %v122_v6, %v121_v60 }
 0x1f3   :  { %v251_v39 = vadd.f32 %v250_v35, %v249_v28 }
 0x1f4   :  { %v238_v17 = vrot.slane %v237_v11, 2  ;;  %v124_v18 = vrot.slane %v123_v12, 1 }
 0x1f6   :  { %v125_v23 = vadd.f32 %v124_v18, %v123_v12  ;;  %v239_v25 = vadd.f32 %v238_v17, %v237_v11 }
 0x1f8   :  { %376 = vpush %v125_v23  ;;  %v240_v31 = vrot.slane %v239_v25, 1  ;;  %v327_v23 = vsel %vm261_vm14, 0.2, %v326_v22 }
 0x1f9   :  { %378 = vpush %v134_v26 }
 0x1fa   :  { %380 = vpush %v146_v29  ;;  %v241_v37 = vadd.f32 %v240_v31, %v239_v25  ;;  %v328_v25 = vsel %vm264_vm15, 0.1, %v327_v23 }
 0x1fb   :  { %382 = vpush %v158_v4  ;;  %v329_v26 = vsel %vm267_vm0, 0.3, %v328_v25 }
 0x1fc   :  { %384 = vpush %v173_v33  ;;  %v330_v31 = vsel %vm270_vm1, 1.0, %v329_v26 }
 0x1fd   :  { %386 = vpush %v184_v34 }
 0x1fe   :  { %388 = vpush %v195_v36 }
 0x1ff   :  { %390 = vpush %v231_v38 }
 0x200   :  { %392 = vpush %v241_v37 }
 0x201   :  { %394 = vpush %v251_v39 }
 0x229   :  { %s377_s5 = spop %376 }
 0x22a   :  { %v259_v43 = vstv %s377_s5  ;;  %s379_s18 = spop %378 }
 0x22b   :  { %v260_v45 = vsel %vm258_vm13, %v259_v43, %v257_v42  ;;  %v278_v46 = vstv %s379_s18  ;;  %s381_s19 = spop %380 }
 0x22c   :  { %v279_v47 = vsel %vm258_vm13, %v278_v46, %v277_v44  ;;  %v280_v48 = vstv %s381_s19  ;;  %s383_s20 = spop %382 }
 0x22d   :  { %v281_v49 = vsel %vm261_vm14, %v280_v48, %v279_v47  ;;  %v262_v50 = vstv %s383_s20  ;;  %s385_s21 = spop %384 }
 0x22e   :  { %v263_v51 = vsel %vm261_vm14, %v262_v50, %v260_v45  ;;  %s387_s22 = spop %386  ;;  %v282_v52 = vstv %s385_s21 }
 0x22f   :  { %v265_v53 = vstv %s387_s22  ;;  %s389_s23 = spop %388  ;;  %v283_v54 = vsel %vm264_vm15, %v282_v52, %v281_v49 }
 0x230   :  { %v266_v55 = vsel %vm264_vm15, %v265_v53, %v263_v51  ;;  %s391_s24 = spop %390  ;;  %v271_v58 = vstv %s389_s23 }
 0x231   :  { %v268_v57 = vstv %s391_s24  ;;  %s393_s25 = spop %392 }
 0x232   :  { %v269_v59 = vsel %vm267_vm0, %v268_v57, %v266_v55  ;;  %v284_v60 = vstv %s393_s25  ;;  %s395_s26 = spop %394 }
 0x233   :  { %v272_v61 = vsel %vm270_vm1, %v271_v58, %v269_v59  ;;  %v285_v62 = vsel %vm267_vm0, %v284_v60, %v283_v54  ;;  %s253_s27 = ssub.f32 %s565_s4, %s395_s26 }
 0x234   :  { %v273_v63 = vadd.f32 %v272_v61, %v254_v56 }
 0x235   :  { %v287_v5 = vstv %s253_s27 }
 0x236   :  { %274 = vst [vmem:[#allocation2] sm:$0x1] %v273_v63  ;;  %v288_v6 = vsel %vm286_vm2, %v287_v5, %v285_v62 }
 0x237   :  { %v289_v7 = vadd.f32 %v288_v6, %v275_v3 }
 0x239   :  { %290 = vst [vmem:[#allocation3] sm:$0x1] %v289_v7 }
 0x23d   :  { %v294_v27 = vld [vmem:[#allocation2] sm:$0x1] }
 0x240   :  { %v295_v9 = vld [vmem:[#allocation3] sm:$0x1] }
 0x241   :  { %v299_v10 = vmul.f32 %v370_v8, %v295_v9  ;;  %v296_v19 = vsel %vm270_vm1, 160.0, %v295_v9 }
 0x242   :  { %v322_v21 = vmax.f32 %v296_v19, 1.0  ;;  %vm312_vm6 = vcmp.gt.f32.partialorder %v296_v19, 0.0 }
 0x243   :  { %v301_v11 = vsel %vm300_vm3, %v299_v10, 0.0 }
 0x244   :  { %302 = vadd.xlane.f32.xlu0 %v301_v11  ;;  %413 = vrcp.f32 %v322_v21 }
 0x24e   :  { %v414_v30 = vpop.eup %413 }
 0x2d1   :  { %v303_v12 = vpop.xlane.xlu0 %302 }
 0x2d2   :  { %v304_v13 = vrot.slane %v303_v12, 4 }
 0x2d4   :  { %v305_v14 = vadd.f32 %v304_v13, %v303_v12 }
 0x2d6   :  { %v306_v15 = vrot.slane %v305_v14, 2 }
 0x2d8   :  { %v307_v16 = vadd.f32 %v306_v15, %v305_v14 }
 0x2da   :  { %v308_v17 = vrot.slane %v307_v16, 1 }
 0x2dc   :  { %v309_v18 = vadd.f32 %v308_v17, %v307_v16 }
 0x2de   :  { %396 = vpush %v309_v18 }
 0x30f   :  { %s397_s28 = spop %396 }
 0x310   :  { %p311_p8 = scmp.gt.f32.partialorder %s397_s28, 0.0 }
 0x312   :  { %s314_s29 = scalar_select %p311_p8, 1, 0 }
 0x314   :  { %v315_v24 = vstv %s314_s29 }
 0x315   :  { %vm316_vm5 = vcmp.eq.s32.totalorder %v315_v24, 1 }
 0x316   :  { %vm317_vm7 = vmor %vm313_vm4, %vm316_vm5 }
 0x317   :  { %vm318_vm8 = vmand %vm312_vm6, %vm317_vm7 }
 0x318   :  { %v371_v28 = vsel %vm318_vm8, 1.0, %v464_v1  ;;  %v346_v1 = vshrl.u32 %v46_v0, 7 }
 0x319   :  { %v321_v29 = vmul.f32 %v371_v28, %v294_v27 }
 0x31a   :  { %v347_v42 = vsub.s32 0, %v346_v1 }
 0x31b   :  { %v324_v4 = vmul.f32 %v414_v30, %v321_v29 }
 0x31d   :  { %v331_v32 = vmul.f32 %v330_v31, %v324_v4 }
 0x31f   :  { %v332_v33 = vsel %vm300_vm3, %v331_v32, 0.0 }
 0x320   :  { %333 = vadd.xlane.f32.xlu1 %v332_v33 }
 0x3ad   :  { %v334_v34 = vpop.xlane.xlu1 %333 }
 0x3ae   :  { %v335_v35 = vrot.slane %v334_v34, 4 }
 0x3b0   :  { %v336_v36 = vadd.f32 %v335_v35, %v334_v34 }
 0x3b2   :  { %v337_v37 = vrot.slane %v336_v36, 2 }
 0x3b4   :  { %v338_v38 = vadd.f32 %v337_v37, %v336_v36 }
 0x3b6   :  { %v339_v39 = vrot.slane %v338_v38, 1 }
 0x3b8   :  { %v340_v40 = vadd.f32 %v339_v39, %v338_v38 }
 0x3ba   :  { %398 = vpush %v340_v40 }
 0x3eb   :  { %s399_s30 = spop %398 }
 0x3ec   :  { %v342_v41 = vstv %s399_s30 }
 0x3ed   :  { %v343_v43 = vsel %vm286_vm2, %v342_v41, 0.0 }
 0x3ee   :  { %v344_v44 = vadd.f32 %v343_v43, %v324_v4 }
 0x3f0   :  { %v348_v45 = vrot.slane %v344_v44, %v347_v42 }
 0x3f2   :  { %349 = vst [vmem:[#allocation7] sm:$0xff] %v348_v45 }
 0x3f3   :  { %448 = shalt.err (!%p445_p13)
}
 0x3f4   :  { %s449_s11 = scalar_lea.hbm %s643_s6, 128 }
 0x3f5   :  { %p450_p0 = scmp.ne.s32.totalorder %s643_s6, %s449_s11  ;;  %p453_p1 = scmp.lt.u32.totalorder %s449_s11, %s643_s6 }
 0x3f7   :  { %p455_p2 = pnand %p453_p1, %p450_p0 }
 0x3f9   :  { %458 = shalt.err (!%p455_p2)
}
 0x3fa   :  { %359 = dma.vmem_to_hbm [thread:$0]  %s357_s8, 128, %s643_s6, [#allocation6]  }
 0x3fb   :  { %461 = dma.done.wait [#allocation6], 128  }
 0x3fc   :  { %462 = vsyncadd [#allocation6], 4294967168 }
 0x3fd   :  { %363 = vsyncpa [#allocation5], 1 }
 0x3fe   :  { %364 = vsyncpa [#allocation6], 1 }

</bundles_post_ra>
